<compile_context>
chip_gen: v7x
topology: tpu7x:2x2x1
jax: 0.10.0
libtpu: 0.0.40
codegen_flags: <defaults>
</compile_context>

<pallas_src>
import functools

import jax
import jax.numpy as jnp
from jax.experimental import pallas as pl
from jax.experimental.pallas import tpu as pltpu


def _conv_out_len(L_in, k, stride, padding, dilation):
    return (L_in + 2 * padding - dilation * (k - 1) - 1) // stride + 1


def _tap_bounds(L_in, L_out, t, stride, padding, dilation):
    """Static bounds for scattering tap `t` into the im2col buffer.

    For conv output position l, tap t reads input column
        j = l*stride + t*dilation - padding.
    Returns (l_lo, l_hi, j_lo): the contiguous range of output positions whose
    input column is in-bounds, and the first input column used.  Columns
    outside [l_lo, l_hi) correspond to zero padding (the buffer's zero stripes).
    """
    off = t * dilation - padding
    l_lo = 0 if off >= 0 else (-off + stride - 1) // stride
    top = L_in - 1 - off
    if top < 0:
        return 0, 0, 0
    l_hi = min(L_out, top // stride + 1)
    if l_hi <= l_lo:
        return 0, 0, 0
    return l_lo, l_hi, l_lo * stride + off


def _temporal_block_kernel(x_ref, w1_ref, b1_ref, w2_ref, b2_ref, wd_ref,
                           bd_ref, o_ref, r1_ref, r2_ref, *,
                           K, stride, dilation, padding, Bt, Cin, Cout,
                           L, L1, L2, Lmin, has_downsample):
    """One batch tile (Bt samples) per grid step.

    x_ref : (Bt, Cin, L)            raw input (no pre-padding)
    w1_ref: (Cout, K*Cin)  bf16     tap-major fused conv1 weight
    w2_ref: (Cout, K*Cout) bf16     tap-major fused conv2 weight
    b*_ref: (Cout, 1)      f32
    wd_ref: (Cout, Cin)    bf16     1x1 downsample weight (dummy (1,1) if unused)
    o_ref : (Bt, Cout, Lmin)
    r1_ref: VMEM (K*Cin, L1)  f32   im2col buffer for conv1
    r2_ref: VMEM (K*Cout, L2) f32   im2col buffer for conv2
    """
    # Grid-invariant operands: load once per grid step.
    w1 = w1_ref[...]
    w2 = w2_ref[...]
    b1 = b1_ref[...]
    b2 = b2_ref[...]
    if has_downsample:
        wd = wd_ref[...]
        bd = bd_ref[...]

    # Zero the im2col buffers once per grid step.  Only the padding stripes
    # rely on these zeros; the valid interior is fully overwritten for every
    # sample below (same static geometry each time).
    r1_ref[...] = jnp.zeros_like(r1_ref)
    r2_ref[...] = jnp.zeros_like(r2_ref)

    for b in range(Bt):                          # small static unrolled loop
        x2d = x_ref[b].astype(jnp.float32)       # (Cin, L)

        # ---- conv1: scatter K dilation-shifted taps, one fused bf16 matmul --
        for t in range(K):
            l_lo, l_hi, j_lo = _tap_bounds(L, L1, t, stride, padding, dilation)
            n = l_hi - l_lo
            if n > 0:
                r1_ref[t * Cin:(t + 1) * Cin, l_lo:l_hi] = \
                    x2d[:, j_lo:j_lo + (n - 1) * stride + 1:stride]
        h = jnp.dot(w1, r1_ref[...].astype(jnp.bfloat16),
                    preferred_element_type=jnp.float32)          # (Cout, L1)
        h = jnp.maximum(h + b1, 0.0)             # bias+ReLU; dropout1=identity

        # ---- conv2: same trick on the conv1 activation ----------------------
        for t in range(K):
            l_lo, l_hi, j_lo = _tap_bounds(L1, L2, t, stride, padding, dilation)
            n = l_hi - l_lo
            if n > 0:
                r2_ref[t * Cout:(t + 1) * Cout, l_lo:l_hi] = \
                    h[:, j_lo:j_lo + (n - 1) * stride + 1:stride]
        out = jnp.dot(w2, r2_ref[...].astype(jnp.bfloat16),
                      preferred_element_type=jnp.float32)        # (Cout, L2)
        out = jnp.maximum(out + b2, 0.0)         # bias+ReLU; dropout2=identity

        # ---- residual branch (optional 1x1 downsample conv) -----------------
        if has_downsample:
            res = jnp.dot(wd, x2d.astype(jnp.bfloat16),
                          preferred_element_type=jnp.float32) + bd
        else:
            res = x2d                            # Cin == Cout, keep f32 exact

        # ---- truncate to common length and add ------------------------------
        o_ref[b] = (out[:, :Lmin] + res[:, :Lmin]).astype(o_ref.dtype)


def _pick_batch_tile(n, cap=8):
    for bt in range(min(n, cap), 0, -1):
        if n % bt == 0:
            return bt
    return 1


def temporal_block_forward(x, params, *, kernel_size, stride, dilation,
                           padding, batch_tile_cap=8):
    N, Cin, L = x.shape
    Cout = params["v1"].shape[0]
    K = kernel_size

    # weight_norm effective weights (dim=0): w = g * v / ||v||_{(in,k)}
    def wn(v, g):
        return g * v / jnp.sqrt(jnp.sum(v * v, axis=(1, 2), keepdims=True))

    w1 = wn(params["v1"], params["g1"])                     # (Cout, Cin, K)
    w2 = wn(params["v2"], params["g2"])                     # (Cout, Cout, K)
    # Tap-major fused layout: column index = t*C + c, matching the im2col rows.
    w1f = jnp.transpose(w1, (0, 2, 1)).reshape(Cout, K * Cin).astype(jnp.bfloat16)
    w2f = jnp.transpose(w2, (0, 2, 1)).reshape(Cout, K * Cout).astype(jnp.bfloat16)
    b1 = params["b1"].reshape(Cout, 1).astype(jnp.float32)
    b2 = params["b2"].reshape(Cout, 1).astype(jnp.float32)

    has_downsample = Cin != Cout
    if has_downsample:
        wd = params["wd"][:, :, 0].astype(jnp.bfloat16)     # (Cout, Cin)
        bd = params["bd"].reshape(Cout, 1).astype(jnp.float32)
    else:
        wd = jnp.zeros((1, 1), jnp.bfloat16)
        bd = jnp.zeros((1, 1), jnp.float32)

    L1 = _conv_out_len(L, K, stride, padding, dilation)
    L2 = _conv_out_len(L1, K, stride, padding, dilation)
    Lres = L                  # identity / 1x1 stride-1 conv keeps the length
    Lmin = min(L2, Lres)

    Bt = _pick_batch_tile(N, batch_tile_cap)
    grid = (N // Bt,)

    kernel = functools.partial(
        _temporal_block_kernel, K=K, stride=stride, dilation=dilation,
        padding=padding, Bt=Bt, Cin=Cin, Cout=Cout, L=L, L1=L1, L2=L2,
        Lmin=Lmin, has_downsample=has_downsample)

    grid_spec = pltpu.PrefetchScalarGridSpec(
        num_scalar_prefetch=0,
        grid=grid,
        in_specs=[
            pl.BlockSpec((Bt, Cin, L), lambda n: (n, 0, 0)),     # raw x
            pl.BlockSpec((Cout, K * Cin), lambda n: (0, 0)),     # w1 (fused)
            pl.BlockSpec((Cout, 1), lambda n: (0, 0)),           # b1
            pl.BlockSpec((Cout, K * Cout), lambda n: (0, 0)),    # w2 (fused)
            pl.BlockSpec((Cout, 1), lambda n: (0, 0)),           # b2
            pl.BlockSpec(wd.shape, lambda n: (0, 0)),            # wd (1x1)
            pl.BlockSpec(bd.shape, lambda n: (0, 0)),            # bd
        ],
        out_specs=pl.BlockSpec((Bt, Cout, Lmin), lambda n: (n, 0, 0)),
        scratch_shapes=[
            pltpu.VMEM((K * Cin, L1), jnp.float32),   # conv1 im2col buffer
            pltpu.VMEM((K * Cout, L2), jnp.float32),  # conv2 im2col buffer
        ],
    )

    return pl.pallas_call(
        kernel,
        grid_spec=grid_spec,
        out_shape=jax.ShapeDtypeStruct((N, Cout, Lmin), jnp.float32),
        compiler_params=pltpu.CompilerParams(
            dimension_semantics=("parallel",),
            # Above v5e/v6e scoped defaults (16/32 MiB), below v7x's 64 MiB
            # physical VMEM with headroom.
            vmem_limit_bytes=48 * 1024 * 1024,
        ),
    )(x, w1f, b1, w2f, b2, wd, bd)


# ----------------------------- parameter init --------------------------------
def init_params(key, Cin, Cout, K):
    """Synthetic init mirroring the module's __init__ (weight_norm storage)."""
    k1, k2, k3 = jax.random.split(key, 3)

    def kaiming_normal(k, shape):               # fan_in mode, relu gain
        fan_in = shape[1] * shape[2]
        std = (2.0 / fan_in) ** 0.5
        return std * jax.random.normal(k, shape, jnp.float32)

    v1 = kaiming_normal(k1, (Cout, Cin, K))
    g1 = jnp.sqrt(jnp.sum(v1 * v1, axis=(1, 2), keepdims=True))
    v2 = kaiming_normal(k2, (Cout, Cout, K))
    g2 = jnp.sqrt(jnp.sum(v2 * v2, axis=(1, 2), keepdims=True))
    params = dict(v1=v1, g1=g1, b1=jnp.zeros((Cout,), jnp.float32),
                  v2=v2, g2=g2, b2=jnp.zeros((Cout,), jnp.float32))
    if Cin != Cout:
        params["wd"] = kaiming_normal(k3, (Cout, Cin, 1))
        params["bd"] = jnp.zeros((Cout,), jnp.float32)
    return params


# ----------------------------- pure-JAX reference -----------------------------
def reference_forward(x, params, *, kernel_size, stride, dilation, padding):
    def wn(v, g):
        return g * v / jnp.sqrt(jnp.sum(v * v, axis=(1, 2), keepdims=True))

    def conv(z, w, b, s, p, d):
        y = jax.lax.conv_general_dilated(
            z, w, window_strides=(s,), padding=[(p, p)], rhs_dilation=(d,),
            dimension_numbers=("NCH", "OIH", "NCH"))
        return y + b[None, :, None]

    out = jax.nn.relu(conv(x, wn(params["v1"], params["g1"]), params["b1"],
                           stride, padding, dilation))
    out = jax.nn.relu(conv(out, wn(params["v2"], params["g2"]), params["b2"],
                           stride, padding, dilation))
    res = conv(x, params["wd"], params["bd"], 1, 0, 1) if "wd" in params else x
    Lmin = min(out.shape[2], res.shape[2])
    return out[:, :, :Lmin] + res[:, :, :Lmin]


if __name__ == "__main__":
    key = jax.random.PRNGKey(0)
    kx, kp = jax.random.split(key)

    # Small TCN-like config: in=4, out=8, k=3, stride=1, dilation=2,
    # padding=(k-1)*dilation=4 (exercises halo handling + min-length truncation
    # + the 1x1 downsample residual path).
    N, Cin, Cout, L = 2, 4, 8, 16
    K, stride, dilation = 3, 1, 2
    padding = (K - 1) * dilation

    x = jax.random.normal(kx, (N, Cin, L), jnp.float32)
    params = init_params(kp, Cin, Cout, K)

    out = temporal_block_forward(x, params, kernel_size=K, stride=stride,
                                 dilation=dilation, padding=padding)
    out = jax.block_until_ready(out)

    ref = reference_forward(x, params, kernel_size=K, stride=stride,
                            dilation=dilation, padding=padding)
    assert out.shape == ref.shape, (out.shape, ref.shape)
    max_err = float(jnp.max(jnp.abs(out - ref)))
    # bf16 MXU operands (f32 accumulation) -> looser tolerance than pure f32.
    assert jnp.allclose(out, ref, atol=1e-1, rtol=5e-2), max_err
    print("KERNEL_OK")
</pallas_src>

<mosaic_0001>
module attributes {stable_mosaic.version = 11 : i64} {
  func.func @_temporal_block_kernel(%arg0: i32, %arg1: memref<2x4x16xf32, #tpu.memory_space<vmem>>, %arg2: memref<8x12xbf16, #tpu.memory_space<vmem>>, %arg3: memref<8x1xf32, #tpu.memory_space<vmem>>, %arg4: memref<8x24xbf16, #tpu.memory_space<vmem>>, %arg5: memref<8x1xf32, #tpu.memory_space<vmem>>, %arg6: memref<8x4xbf16, #tpu.memory_space<vmem>>, %arg7: memref<8x1xf32, #tpu.memory_space<vmem>>, %arg8: memref<2x8x16xf32, #tpu.memory_space<vmem>>, %arg9: memref<12x20xf32, #tpu.memory_space<vmem>>, %arg10: memref<24x24xf32, #tpu.memory_space<vmem>>) attributes {dimension_semantics = [#tpu.dimension_semantics<parallel>], iteration_bounds = array<i64: 1>, scalar_prefetch = 0 : i64, scratch_operands = 2 : i64, tpu.core_type = #tpu.core_type<tc>, window_params = [{transform_indices = @transform_0, window_bounds = array<i64: 2, 4, 16>}, {pipeline_mode = #tpu.pipeline_mode<synchronous>, transform_indices = @transform_1, window_bounds = array<i64: 8, 12>}, {pipeline_mode = #tpu.pipeline_mode<synchronous>, transform_indices = @transform_2, window_bounds = array<i64: 8, 1>}, {pipeline_mode = #tpu.pipeline_mode<synchronous>, transform_indices = @transform_3, window_bounds = array<i64: 8, 24>}, {pipeline_mode = #tpu.pipeline_mode<synchronous>, transform_indices = @transform_4, window_bounds = array<i64: 8, 1>}, {pipeline_mode = #tpu.pipeline_mode<synchronous>, transform_indices = @transform_5, window_bounds = array<i64: 8, 4>}, {pipeline_mode = #tpu.pipeline_mode<synchronous>, transform_indices = @transform_6, window_bounds = array<i64: 8, 1>}, {transform_indices = @transform_7, window_bounds = array<i64: 2, 8, 16>}]} {
    %c0 = arith.constant 0 : index
    %c0_0 = arith.constant 0 : index
    %0 = vector.load %arg2[%c0, %c0_0] : memref<8x12xbf16, #tpu.memory_space<vmem>>, vector<8x12xbf16>
    %c0_1 = arith.constant 0 : index
    %c0_2 = arith.constant 0 : index
    %1 = vector.load %arg4[%c0_1, %c0_2] : memref<8x24xbf16, #tpu.memory_space<vmem>>, vector<8x24xbf16>
    %c0_3 = arith.constant 0 : index
    %c0_4 = arith.constant 0 : index
    %2 = vector.load %arg3[%c0_3, %c0_4] : memref<8x1xf32, #tpu.memory_space<vmem>>, vector<8x1xf32>
    %c0_5 = arith.constant 0 : index
    %c0_6 = arith.constant 0 : index
    %3 = vector.load %arg5[%c0_5, %c0_6] : memref<8x1xf32, #tpu.memory_space<vmem>>, vector<8x1xf32>
    %c0_7 = arith.constant 0 : index
    %c0_8 = arith.constant 0 : index
    %4 = vector.load %arg6[%c0_7, %c0_8] : memref<8x4xbf16, #tpu.memory_space<vmem>>, vector<8x4xbf16>
    %c0_9 = arith.constant 0 : index
    %c0_10 = arith.constant 0 : index
    %5 = vector.load %arg7[%c0_9, %c0_10] : memref<8x1xf32, #tpu.memory_space<vmem>>, vector<8x1xf32>
    %cst = arith.constant 0.000000e+00 : f32
    %6 = vector.broadcast %cst : f32 to vector<12x20xf32>
    %c0_11 = arith.constant 0 : index
    %c0_12 = arith.constant 0 : index
    %7 = vector.load %arg9[%c0_11, %c0_12] : memref<12x20xf32, #tpu.memory_space<vmem>>, vector<12x20xf32>
    tpu.vector_store %arg9[%c0_11, %c0_12], %6 {strides = array<i32>} : memref<12x20xf32, #tpu.memory_space<vmem>>, vector<12x20xf32>,
    %cst_13 = arith.constant 0.000000e+00 : f32
    %8 = vector.broadcast %cst_13 : f32 to vector<24x24xf32>
    %c0_14 = arith.constant 0 : index
    %c0_15 = arith.constant 0 : index
    %9 = vector.load %arg10[%c0_14, %c0_15] : memref<24x24xf32, #tpu.memory_space<vmem>>, vector<24x24xf32>
    tpu.vector_store %arg10[%c0_14, %c0_15], %8 {strides = array<i32>} : memref<24x24xf32, #tpu.memory_space<vmem>>, vector<24x24xf32>,
    %c0_16 = arith.constant 0 : index
    %c0_17 = arith.constant 0 : index
    %c0_18 = arith.constant 0 : index
    %10 = vector.load %arg1[%c0_16, %c0_17, %c0_18] : memref<2x4x16xf32, #tpu.memory_space<vmem>>, vector<1x4x16xf32>
    %11 = vector.shape_cast %10 : vector<1x4x16xf32> to vector<4x16xf32>
    %c0_19 = arith.constant 0 : index
    %c4 = arith.constant 4 : index
    %12 = vector.load %arg9[%c0_19, %c4] : memref<12x20xf32, #tpu.memory_space<vmem>>, vector<4x16xf32>
    tpu.vector_store %arg9[%c0_19, %c4], %11 {strides = array<i32>} : memref<12x20xf32, #tpu.memory_space<vmem>>, vector<4x16xf32>,
    %c4_20 = arith.constant 4 : index
    %c2 = arith.constant 2 : index
    %13 = vector.load %arg9[%c4_20, %c2] : memref<12x20xf32, #tpu.memory_space<vmem>>, vector<4x16xf32>
    tpu.vector_store %arg9[%c4_20, %c2], %11 {strides = array<i32>} : memref<12x20xf32, #tpu.memory_space<vmem>>, vector<4x16xf32>,
    %c8 = arith.constant 8 : index
    %c0_21 = arith.constant 0 : index
    %14 = vector.load %arg9[%c8, %c0_21] : memref<12x20xf32, #tpu.memory_space<vmem>>, vector<4x16xf32>
    tpu.vector_store %arg9[%c8, %c0_21], %11 {strides = array<i32>} : memref<12x20xf32, #tpu.memory_space<vmem>>, vector<4x16xf32>,
    %c0_22 = arith.constant 0 : index
    %c0_23 = arith.constant 0 : index
    %15 = vector.load %arg9[%c0_22, %c0_23] : memref<12x20xf32, #tpu.memory_space<vmem>>, vector<12x20xf32>
    %16 = arith.truncf %15 : vector<12x20xf32> to vector<12x20xbf16>
    %cst_24 = arith.constant dense<0.000000e+00> : vector<8x20xf32>
    %17 = tpu.matmul %0, %16, %cst_24 {dimension_numbers = #tpu.dot_dimension_numbers<[1], [0], [0], [1], [0, 0, 1, 1], [], []>} : vector<8x12xbf16>, vector<12x20xbf16>, vector<8x20xf32> -> vector<8x20xf32>
    %18 = vector.broadcast %2 : vector<8x1xf32> to vector<8x20xf32>
    %19 = arith.addf %17, %18 : vector<8x20xf32>
    %cst_25 = arith.constant 0.000000e+00 : f32
    %20 = vector.broadcast %cst_25 : f32 to vector<8x20xf32>
    %21 = arith.maximumf %19, %20 : vector<8x20xf32>
    %c0_26 = arith.constant 0 : index
    %c4_27 = arith.constant 4 : index
    %22 = vector.load %arg10[%c0_26, %c4_27] : memref<24x24xf32, #tpu.memory_space<vmem>>, vector<8x20xf32>
    tpu.vector_store %arg10[%c0_26, %c4_27], %21 {strides = array<i32>} : memref<24x24xf32, #tpu.memory_space<vmem>>, vector<8x20xf32>,
    %c8_28 = arith.constant 8 : index
    %c2_29 = arith.constant 2 : index
    %23 = vector.load %arg10[%c8_28, %c2_29] : memref<24x24xf32, #tpu.memory_space<vmem>>, vector<8x20xf32>
    tpu.vector_store %arg10[%c8_28, %c2_29], %21 {strides = array<i32>} : memref<24x24xf32, #tpu.memory_space<vmem>>, vector<8x20xf32>,
    %c16 = arith.constant 16 : index
    %c0_30 = arith.constant 0 : index
    %24 = vector.load %arg10[%c16, %c0_30] : memref<24x24xf32, #tpu.memory_space<vmem>>, vector<8x20xf32>
    tpu.vector_store %arg10[%c16, %c0_30], %21 {strides = array<i32>} : memref<24x24xf32, #tpu.memory_space<vmem>>, vector<8x20xf32>,
    %c0_31 = arith.constant 0 : index
    %c0_32 = arith.constant 0 : index
    %25 = vector.load %arg10[%c0_31, %c0_32] : memref<24x24xf32, #tpu.memory_space<vmem>>, vector<24x24xf32>
    %26 = arith.truncf %25 : vector<24x24xf32> to vector<24x24xbf16>
    %cst_33 = arith.constant dense<0.000000e+00> : vector<8x24xf32>
    %27 = tpu.matmul %1, %26, %cst_33 {dimension_numbers = #tpu.dot_dimension_numbers<[1], [0], [0], [1], [0, 0, 1, 1], [], []>} : vector<8x24xbf16>, vector<24x24xbf16>, vector<8x24xf32> -> vector<8x24xf32>
    %28 = vector.broadcast %3 : vector<8x1xf32> to vector<8x24xf32>
    %29 = arith.addf %27, %28 : vector<8x24xf32>
    %cst_34 = arith.constant 0.000000e+00 : f32
    %30 = vector.broadcast %cst_34 : f32 to vector<8x24xf32>
    %31 = arith.maximumf %29, %30 : vector<8x24xf32>
    %32 = arith.truncf %11 : vector<4x16xf32> to vector<4x16xbf16>
    %cst_35 = arith.constant dense<0.000000e+00> : vector<8x16xf32>
    %33 = tpu.matmul %4, %32, %cst_35 {dimension_numbers = #tpu.dot_dimension_numbers<[1], [0], [0], [1], [0, 0, 1, 1], [], []>} : vector<8x4xbf16>, vector<4x16xbf16>, vector<8x16xf32> -> vector<8x16xf32>
    %34 = vector.broadcast %5 : vector<8x1xf32> to vector<8x16xf32>
    %35 = arith.addf %33, %34 : vector<8x16xf32>
    %36 = vector.extract_strided_slice %31 {offsets = [0, 0], sizes = [8, 16], strides = [1, 1]} : vector<8x24xf32> to vector<8x16xf32>
    %37 = arith.addf %36, %35 : vector<8x16xf32>
    %c0_36 = arith.constant 0 : index
    %c0_37 = arith.constant 0 : index
    %c0_38 = arith.constant 0 : index
    %38 = vector.load %arg8[%c0_36, %c0_37, %c0_38] : memref<2x8x16xf32, #tpu.memory_space<vmem>>, vector<1x8x16xf32>
    %39 = vector.shape_cast %38 : vector<1x8x16xf32> to vector<8x16xf32>
    %40 = vector.shape_cast %37 : vector<8x16xf32> to vector<1x8x16xf32>
    tpu.vector_store %arg8[%c0_36, %c0_37, %c0_38], %40 {strides = array<i32>} : memref<2x8x16xf32, #tpu.memory_space<vmem>>, vector<1x8x16xf32>,
    %c1 = arith.constant 1 : index
    %c0_39 = arith.constant 0 : index
    %c0_40 = arith.constant 0 : index
    %41 = vector.load %arg1[%c1, %c0_39, %c0_40] : memref<2x4x16xf32, #tpu.memory_space<vmem>>, vector<1x4x16xf32>
    %42 = vector.shape_cast %41 : vector<1x4x16xf32> to vector<4x16xf32>
    %c0_41 = arith.constant 0 : index
    %c4_42 = arith.constant 4 : index
    %43 = vector.load %arg9[%c0_41, %c4_42] : memref<12x20xf32, #tpu.memory_space<vmem>>, vector<4x16xf32>
    tpu.vector_store %arg9[%c0_41, %c4_42], %42 {strides = array<i32>} : memref<12x20xf32, #tpu.memory_space<vmem>>, vector<4x16xf32>,
    %c4_43 = arith.constant 4 : index
    %c2_44 = arith.constant 2 : index
    %44 = vector.load %arg9[%c4_43, %c2_44] : memref<12x20xf32, #tpu.memory_space<vmem>>, vector<4x16xf32>
    tpu.vector_store %arg9[%c4_43, %c2_44], %42 {strides = array<i32>} : memref<12x20xf32, #tpu.memory_space<vmem>>, vector<4x16xf32>,
    %c8_45 = arith.constant 8 : index
    %c0_46 = arith.constant 0 : index
    %45 = vector.load %arg9[%c8_45, %c0_46] : memref<12x20xf32, #tpu.memory_space<vmem>>, vector<4x16xf32>
    tpu.vector_store %arg9[%c8_45, %c0_46], %42 {strides = array<i32>} : memref<12x20xf32, #tpu.memory_space<vmem>>, vector<4x16xf32>,
    %c0_47 = arith.constant 0 : index
    %c0_48 = arith.constant 0 : index
    %46 = vector.load %arg9[%c0_47, %c0_48] : memref<12x20xf32, #tpu.memory_space<vmem>>, vector<12x20xf32>
    %47 = arith.truncf %46 : vector<12x20xf32> to vector<12x20xbf16>
    %cst_49 = arith.constant dense<0.000000e+00> : vector<8x20xf32>
    %48 = tpu.matmul %0, %47, %cst_49 {dimension_numbers = #tpu.dot_dimension_numbers<[1], [0], [0], [1], [0, 0, 1, 1], [], []>} : vector<8x12xbf16>, vector<12x20xbf16>, vector<8x20xf32> -> vector<8x20xf32>
    %49 = vector.broadcast %2 : vector<8x1xf32> to vector<8x20xf32>
    %50 = arith.addf %48, %49 : vector<8x20xf32>
    %cst_50 = arith.constant 0.000000e+00 : f32
    %51 = vector.broadcast %cst_50 : f32 to vector<8x20xf32>
    %52 = arith.maximumf %50, %51 : vector<8x20xf32>
    %c0_51 = arith.constant 0 : index
    %c4_52 = arith.constant 4 : index
    %53 = vector.load %arg10[%c0_51, %c4_52] : memref<24x24xf32, #tpu.memory_space<vmem>>, vector<8x20xf32>
    tpu.vector_store %arg10[%c0_51, %c4_52], %52 {strides = array<i32>} : memref<24x24xf32, #tpu.memory_space<vmem>>, vector<8x20xf32>,
    %c8_53 = arith.constant 8 : index
    %c2_54 = arith.constant 2 : index
    %54 = vector.load %arg10[%c8_53, %c2_54] : memref<24x24xf32, #tpu.memory_space<vmem>>, vector<8x20xf32>
    tpu.vector_store %arg10[%c8_53, %c2_54], %52 {strides = array<i32>} : memref<24x24xf32, #tpu.memory_space<vmem>>, vector<8x20xf32>,
    %c16_55 = arith.constant 16 : index
    %c0_56 = arith.constant 0 : index
    %55 = vector.load %arg10[%c16_55, %c0_56] : memref<24x24xf32, #tpu.memory_space<vmem>>, vector<8x20xf32>
    tpu.vector_store %arg10[%c16_55, %c0_56], %52 {strides = array<i32>} : memref<24x24xf32, #tpu.memory_space<vmem>>, vector<8x20xf32>,
    %c0_57 = arith.constant 0 : index
    %c0_58 = arith.constant 0 : index
    %56 = vector.load %arg10[%c0_57, %c0_58] : memref<24x24xf32, #tpu.memory_space<vmem>>, vector<24x24xf32>
    %57 = arith.truncf %56 : vector<24x24xf32> to vector<24x24xbf16>
    %cst_59 = arith.constant dense<0.000000e+00> : vector<8x24xf32>
    %58 = tpu.matmul %1, %57, %cst_59 {dimension_numbers = #tpu.dot_dimension_numbers<[1], [0], [0], [1], [0, 0, 1, 1], [], []>} : vector<8x24xbf16>, vector<24x24xbf16>, vector<8x24xf32> -> vector<8x24xf32>
    %59 = vector.broadcast %3 : vector<8x1xf32> to vector<8x24xf32>
    %60 = arith.addf %58, %59 : vector<8x24xf32>
    %cst_60 = arith.constant 0.000000e+00 : f32
    %61 = vector.broadcast %cst_60 : f32 to vector<8x24xf32>
    %62 = arith.maximumf %60, %61 : vector<8x24xf32>
    %63 = arith.truncf %42 : vector<4x16xf32> to vector<4x16xbf16>
    %cst_61 = arith.constant dense<0.000000e+00> : vector<8x16xf32>
    %64 = tpu.matmul %4, %63, %cst_61 {dimension_numbers = #tpu.dot_dimension_numbers<[1], [0], [0], [1], [0, 0, 1, 1], [], []>} : vector<8x4xbf16>, vector<4x16xbf16>, vector<8x16xf32> -> vector<8x16xf32>
    %65 = vector.broadcast %5 : vector<8x1xf32> to vector<8x16xf32>
    %66 = arith.addf %64, %65 : vector<8x16xf32>
    %67 = vector.extract_strided_slice %62 {offsets = [0, 0], sizes = [8, 16], strides = [1, 1]} : vector<8x24xf32> to vector<8x16xf32>
    %68 = arith.addf %67, %66 : vector<8x16xf32>
    %c1_62 = arith.constant 1 : index
    %c0_63 = arith.constant 0 : index
    %c0_64 = arith.constant 0 : index
    %69 = vector.load %arg8[%c1_62, %c0_63, %c0_64] : memref<2x8x16xf32, #tpu.memory_space<vmem>>, vector<1x8x16xf32>
    %70 = vector.shape_cast %69 : vector<1x8x16xf32> to vector<8x16xf32>
    %71 = vector.shape_cast %68 : vector<8x16xf32> to vector<1x8x16xf32>
    tpu.vector_store %arg8[%c1_62, %c0_63, %c0_64], %71 {strides = array<i32>} : memref<2x8x16xf32, #tpu.memory_space<vmem>>, vector<1x8x16xf32>,
    return
  }
  func.func @transform_0(%arg0: i32) -> (i32, i32, i32) {
    %c0_i32 = arith.constant 0 : i32
    %c0_i32_0 = arith.constant 0 : i32
    %c0_i32_1 = arith.constant 0 : i32
    return %arg0, %c0_i32, %c0_i32_0 : i32, i32, i32
  }
  func.func @transform_1(%arg0: i32) -> (i32, i32) {
    %c0_i32 = arith.constant 0 : i32
    %c0_i32_0 = arith.constant 0 : i32
    %c0_i32_1 = arith.constant 0 : i32
    return %c0_i32, %c0_i32_0 : i32, i32
  }
  func.func @transform_2(%arg0: i32) -> (i32, i32) {
    %c0_i32 = arith.constant 0 : i32
    %c0_i32_0 = arith.constant 0 : i32
    %c0_i32_1 = arith.constant 0 : i32
    return %c0_i32, %c0_i32_0 : i32, i32
  }
  func.func @transform_3(%arg0: i32) -> (i32, i32) {
    %c0_i32 = arith.constant 0 : i32
    %c0_i32_0 = arith.constant 0 : i32
    %c0_i32_1 = arith.constant 0 : i32
    return %c0_i32, %c0_i32_0 : i32, i32
  }
  func.func @transform_4(%arg0: i32) -> (i32, i32) {
    %c0_i32 = arith.constant 0 : i32
    %c0_i32_0 = arith.constant 0 : i32
    %c0_i32_1 = arith.constant 0 : i32
    return %c0_i32, %c0_i32_0 : i32, i32
  }
  func.func @transform_5(%arg0: i32) -> (i32, i32) {
    %c0_i32 = arith.constant 0 : i32
    %c0_i32_0 = arith.constant 0 : i32
    %c0_i32_1 = arith.constant 0 : i32
    return %c0_i32, %c0_i32_0 : i32, i32
  }
  func.func @transform_6(%arg0: i32) -> (i32, i32) {
    %c0_i32 = arith.constant 0 : i32
    %c0_i32_0 = arith.constant 0 : i32
    %c0_i32_1 = arith.constant 0 : i32
    return %c0_i32, %c0_i32_0 : i32, i32
  }
  func.func @transform_7(%arg0: i32) -> (i32, i32, i32) {
    %c0_i32 = arith.constant 0 : i32
    %c0_i32_0 = arith.constant 0 : i32
    %c0_i32_1 = arith.constant 0 : i32
    return %arg0, %c0_i32, %c0_i32_0 : i32, i32, i32
  }
}

</mosaic_0001>

<bundles_post_ra>
// kernel: tpu_custom_call.1
= control target key start
LH: loop header
LB: loop body
LE: loop exit
PB: predicated region body
PF: predicated region fallthrough
CT: control target
= control target key end

     0   :  { %vm54_vm0 = vcmask 125952   ;;  %vm36_vm1 = vcmask 158720   ;;  %s516_s26 = smov 4   ;;  %v517_v1 = vmov 0.0   ;;  %vm34_vm2 = vcmask 162816   ;;  %s670_s0 = inlined_call_operand.vmem [shape: f32[2,4,16], index: 0, kind: input, shape index: {}]   ;;  %s671_s1 = inlined_call_operand.vmem [shape: bf16[8,12], index: 1, kind: input, shape index: {}]   ;;  %s672_s2 = inlined_call_operand.vmem [shape: f32[8,1], index: 2, kind: input, shape index: {}]   ;;  %s673_s3 = inlined_call_operand.vmem [shape: bf16[8,24], index: 3, kind: input, shape index: {}]   ;;  %s674_s4 = inlined_call_operand.vmem [shape: f32[8,1], index: 4, kind: input, shape index: {}]   ;;  %s675_s5 = inlined_call_operand.vmem [shape: bf16[8,4], index: 5, kind: input, shape index: {}]   ;;  %s676_s6 = inlined_call_operand.vmem [shape: f32[8,1], index: 6, kind: input, shape index: {}]   ;;  %s677_s7 = inlined_call_operand.hbm [shape: f32[2,8,16], index: 7, kind: output, shape index: {}]  }
   0x1   :  { %v42_v0 = vld [vmem:[%s670_s0] sm:$0xf]  ;;  %37 = vst.msk [vmem:[#allocation2 + $0x8] sm:$0xf] %vm36_vm1, %v517_v1  ;;  %442 = vmatprep.subr.bf16.mxu0 %v517_v1  ;;  %448 = vmatprep.subr.bf16.mxu1 %v517_v1 }
   0x2   :  { %44 = vrot.lane.b32.xlu0 %v42_v0, %s516_s26  ;;  %55 = vst.msk [vmem:[#allocation2 + $0x8] sm:$0xf] %vm54_vm0, %v42_v0 }
   0x3   :  { %35 = vst.msk [vmem:[#allocation2] sm:$0xff] %vm34_vm2, %v517_v1 }
   0x4   :  { %12 = vsyncpa [#allocation5], 0  ;;  %vm518_vm3 = vmmov 0   ;;  %s519_s27 = smov 2   ;;  %v30_v2 = vld [vmem:[%s672_s2] sm:$0xff]  ;;  %v520_v3 = vmov 0   ;;  %v183_v19 = vpack.c.bf16 %v42_v0, %v42_v0 }
   0x5   :  { %444 = vmatprep.mubr.msk.bf16.mxu0 %vm518_vm3, %v517_v1  ;;  %452 = vmatprep.mubr.msk.bf16.mxu1 %vm518_vm3, %v517_v1  ;;  %vm38_vm4 = vcmask 195584   ;;  %vm47_vm5 = vcmask 158752   ;;  %vm52_vm6 = vcmask 142352   ;;  %vm68_vm7 = vcmask 1045504   ;;  %v28_v10 = vld [vmem:[%s671_s1] sm:$0xf] }
   0x6   :  { %49 = vrot.lane.b32.xlu0 %v42_v0, %s519_s27  ;;  %490 = vset.pattern.permute.xlu1 %v520_v3  ;;  %41 = vst.msk [vmem:[#allocation3 + $0x10] sm:$0xff] %vm38_vm4, %v517_v1  ;;  %39 = vst.msk [vmem:[#allocation3] sm:$0xff] %vm38_vm4, %v517_v1  ;;  %vm64_vm8 = vcmask 97280   ;;  %v601_v11 = vld [vmem:[%s670_s0 + $0x4] sm:$0xf]  ;;  %vm193_vm9 = vcmask 1041408  }
   0x7   :  { %491 = vset.pattern.permute.xlu0 %v520_v3  ;;  %61 = vperm.xlu1 %490, %v30_v2   ;;  %40 = vst.msk [vmem:[#allocation3 + $0x8] sm:$0xff] %vm38_vm4, %v517_v1  ;;  %v195_v20 = vsel %vm193_vm9, %v183_v19, 0  ;;  %v32_v21 = vld [vmem:[%s675_s5] sm:$0xf]  ;;  %vm189_vm10 = vcmask 31744   ;;  %vm122_vm11 = vcmask 179216   ;;  %v358_v45 = vpack.c.bf16 %v601_v11, %v601_v11 }
   0x8   :  { %vm117_vm12 = vcmask 195616   ;;  %vm138_vm13 = vcmask 1043456   ;;  %v29_v35 = vld [vmem:[%s673_s3] sm:$0xf]  ;;  %vm238_vm14 = vcmask 130048  }
   0x9   :  { %v57_v6 = vld [vmem:[#allocation2 + $0x8] sm:$0xf]  ;;  %v360_v48 = vsel %vm193_vm9, %v358_v45, 0  ;;  %v31_v49 = vld [vmem:[%s674_s4] sm:$0xff]  ;;  %s521_s4 = smov [#allocation4]  }
   0xa   :  { %251 = vst.msk [vmem:[#allocation2 + $0x8] sm:$0xf] %vm54_vm0, %v601_v11  ;;  %v33_v50 = vld [vmem:[%s676_s6] sm:$0xff]  ;;  %s410_s6 = sshll.u32 %s521_s4, 4  ;;  %s411_s6 = int_to_ptr.vmem [resolvable:$true] %s410_s6 }
   0xb   :  { %s492_s14 = scalar_lea.vmem %s411_s6, 256  ;;  %p497_p1 = scmp.lt.s32.totalorder %s411_s6, %s411_s6 }
   0xc   :  { %p493_p0 = scmp.ne.s32.totalorder %s411_s6, %s492_s14  ;;  %p498_p2 = scmp.lt.s32.totalorder %s492_s14, %s492_s14 }
   0xe   :  { %p499_p3 = por %p498_p2, %p497_p1 }
  0x10   :  { %p500_p4 = pnand %p499_p3, %p493_p0 }
  0x11   :  { %v253_v31 = vld [vmem:[#allocation2 + $0x8] sm:$0xf] }
  0x74   :  { %v45_v4 = vpop.permute.xlu0 %44 }
  0x75   :  { %48 = vst.msk [vmem:[#allocation2] sm:$0xf] %vm47_vm5, %v45_v4 }
  0x78   :  { %v50_v5 = vpop.permute.xlu0 %49 }
  0x79   :  { %53 = vst.msk [vmem:[#allocation2 + $0x4] sm:$0xf] %vm52_vm6, %v50_v5 }
  0x80   :  { %v56_v7 = vld [vmem:[#allocation2] sm:$0xff] }
  0x81   :  { %v58_v8 = vpack.c.bf16 %v57_v6, %v56_v7 }
  0x83   :  { %v70_v9 = vsel %vm68_vm7, %v58_v8, 0 }
  0x84   :  { %443 = vmatpush3.bf16.msra.mxu0 %v70_v9 }
  0x85   :  { %456 = vmatprep.subr.bf16.mxu0 %v517_v1 }
  0x86   :  { %v62_v12 = vpop.permute.xlu1 %61 }
  0x87   :  { %445 = vmatmul.mubr.msk.bf16.vlgmr.msra.gmra.mrb[0].mxu0 %vm64_vm8, %v28_v10 }
  0x88   :  { %458 = vmatprep.mubr.msk.bf16.mxu0 %vm518_vm3, %v517_v1  ;;  %457 = vmatpush3.bf16.msra.mxu0 %v195_v20 }
  0x89   :  { %468 = vmatprep.subr.bf16.mxu0 %v517_v1 }
  0x8f   :  { %459 = vmatmul.mubr.msk.bf16.vlgmr.msra.gmra.mrb[4].mxu0 %vm189_vm10, %v32_v21 }
  0x90   :  { %472 = vmatprep.mubr.msk.bf16.mxu0 %vm518_vm3, %v517_v1 }
 0x15a   :  { %v106_v13 = vpop.f32.mrb[0].mxu0 }
 0x15b   :  { %v107_v14 = vadd.f32 %v106_v13, %v62_v12  ;;  %v446_v15 = vpop.f32.mrb[1].mxu0 }
 0x15c   :  { %v109_v16 = vpop.f32.mrb[2].mxu0 }
 0x15d   :  { %v112_v17 = vmax.f32 %v107_v14, 0.0  ;;  %v447_v18 = vpop.f32.mrb[3].mxu0 }
 0x15f   :  { %124 = vst.msk [vmem:[#allocation3 + $0x10] sm:$0xff] %vm34_vm2, %v112_v17  ;;  %119 = vrot.lane.b32.xlu0 %v112_v17, %s519_s27  ;;  %114 = vrot.lane.b32.xlu1 %v112_v17, %s516_s26 }
 0x162   :  { %v231_v51 = vpop.f32.mrb[4].mxu0 }
 0x163   :  { %247 = vrot.lane.b32.xlu0 %v601_v11, %s519_s27  ;;  %243 = vrot.lane.b32.xlu1 %v601_v11, %s516_s26  ;;  %v460_v52 = vpop.f32.mrb[5].mxu0 }
 0x164   :  { %v234_v53 = vpop.f32.mrb[6].mxu0 }
 0x165   :  { %v461_v54 = vpop.f32.mrb[7].mxu0 }
 0x166   :  { %v127_v26 = vld [vmem:[#allocation3 + $0x10] sm:$0xff] }
 0x167   :  { %v129_v30 = vpack.c.bf16 %v127_v26, %v127_v26 }
 0x169   :  { %v140_v34 = vsel %vm138_vm13, %v129_v30, 0 }
 0x1d1   :  { %v120_v22 = vpop.permute.xlu0 %119  ;;  %v115_v23 = vpop.permute.xlu1 %114 }
 0x1d2   :  { %123 = vst.msk [vmem:[#allocation3 + $0x8] sm:$0xff] %vm122_vm11, %v120_v22 }
 0x1d3   :  { %118 = vst.msk [vmem:[#allocation3] sm:$0xff] %vm117_vm12, %v115_v23 }
 0x1d5   :  { %v248_v24 = vpop.permute.xlu0 %247  ;;  %v244_v25 = vpop.permute.xlu1 %243 }
 0x1d6   :  { %250 = vst.msk [vmem:[#allocation2 + $0x4] sm:$0xf] %vm52_vm6, %v248_v24 }
 0x1d7   :  { %246 = vst.msk [vmem:[#allocation2] sm:$0xf] %vm47_vm5, %v244_v25 }
 0x1d9   :  { %v126_v28 = vld [vmem:[#allocation3 + $0x8] sm:$0xff] }
 0x1da   :  { %v125_v27 = vld [vmem:[#allocation3] sm:$0xff] }
 0x1db   :  { %v128_v29 = vpack.c.bf16 %v126_v28, %v125_v27 }
 0x1dd   :  { %449 = vmatpush3.bf16.msra.mxu1 %v128_v29 }
 0x1de   :  { %450 = vmatprep.subr.bf16.mxu1 %v517_v1  ;;  %v252_v32 = vld [vmem:[#allocation2] sm:$0xff] }
 0x1df   :  { %v254_v33 = vpack.c.bf16 %v253_v31, %v252_v32 }
 0x1e1   :  { %451 = vmatpush3.bf16.msra.mxu1 %v140_v34  ;;  %v256_v36 = vsel %vm68_vm7, %v254_v33, 0 }
 0x1e2   :  { %462 = vmatprep.subr.bf16.mxu1 %v517_v1 }
 0x1e4   :  { %453 = vmatmul.mubr.msk.bf16.vlgmr.msra.gmra.mrb[0].mxu1 %vm38_vm4, %v29_v35 }
 0x1e5   :  { %463 = vmatpush3.bf16.msra.mxu1 %v256_v36  ;;  %464 = vmatprep.mubr.msk.bf16.mxu1 %vm518_vm3, %v517_v1 }
 0x1e6   :  { %476 = vmatprep.subr.bf16.mxu1 %v517_v1 }
 0x1ec   :  { %465 = vmatmul.mubr.msk.bf16.vlgmr.msra.gmra.mrb[4].mxu1 %vm64_vm8, %v28_v10 }
 0x1ed   :  { %478 = vmatprep.mubr.msk.bf16.mxu1 %vm518_vm3, %v517_v1  ;;  %477 = vmatpush3.bf16.msra.mxu1 %v360_v48 }
 0x1f4   :  { %479 = vmatmul.mubr.msk.bf16.vlgmr.msra.gmra.mrb[8].mxu1 %vm189_vm10, %v32_v21 }
 0x2b7   :  { %v176_v37 = vpop.f32.mrb[0].mxu1 }
 0x2b8   :  { %v454_v38 = vpop.f32.mrb[1].mxu1 }
 0x2b9   :  { %v179_v39 = vpop.f32.mrb[2].mxu1 }
 0x2ba   :  { %v455_v40 = vpop.f32.mrb[3].mxu1 }
 0x2bf   :  { %v292_v41 = vpop.f32.mrb[4].mxu1 }
 0x2c0   :  { %v293_v42 = vadd.f32 %v292_v41, %v62_v12  ;;  %v466_v43 = vpop.f32.mrb[5].mxu1 }
 0x2c1   :  { %v295_v44 = vpop.f32.mrb[6].mxu1 }
 0x2c2   :  { %v298_v46 = vmax.f32 %v293_v42, 0.0  ;;  %v467_v47 = vpop.f32.mrb[7].mxu1 }
 0x2c4   :  { %308 = vst.msk [vmem:[#allocation3 + $0x10] sm:$0xff] %vm34_vm2, %v298_v46  ;;  %304 = vrot.lane.b32.xlu0 %v298_v46, %s519_s27  ;;  %300 = vrot.lane.b32.xlu1 %v298_v46, %s516_s26 }
 0x2c7   :  { %v396_v6 = vpop.f32.mrb[8].mxu1 }
 0x2c8   :  { %132 = vperm.xlu1 %490, %v31_v49   ;;  %186 = vperm.xlu0 %491, %v33_v50   ;;  %v480_v7 = vpop.f32.mrb[9].mxu1 }
 0x2c9   :  { %v399_v8 = vpop.f32.mrb[10].mxu1 }
 0x2ca   :  { %v481_v9 = vpop.f32.mrb[11].mxu1 }
 0x2cb   :  { %v311_v57 = vld [vmem:[#allocation3 + $0x10] sm:$0xff] }
 0x2cc   :  { %v313_v61 = vpack.c.bf16 %v311_v57, %v311_v57 }
 0x2ce   :  { %v315_v62 = vsel %vm138_vm13, %v313_v61, 0 }
 0x336   :  { %v305_v55 = vpop.permute.xlu0 %304  ;;  %v301_v56 = vpop.permute.xlu1 %300 }
 0x337   :  { %307 = vst.msk [vmem:[#allocation3 + $0x8] sm:$0xff] %vm122_vm11, %v305_v55 }
 0x338   :  { %303 = vst.msk [vmem:[#allocation3] sm:$0xff] %vm117_vm12, %v301_v56 }
 0x33e   :  { %v310_v59 = vld [vmem:[#allocation3 + $0x8] sm:$0xff] }
 0x33f   :  { %v309_v58 = vld [vmem:[#allocation3] sm:$0xff] }
 0x340   :  { %v312_v60 = vpack.c.bf16 %v310_v59, %v309_v58 }
 0x342   :  { %469 = vmatpush3.bf16.msra.mxu0 %v312_v60 }
 0x343   :  { %470 = vmatprep.subr.bf16.mxu0 %v517_v1 }
 0x346   :  { %471 = vmatpush3.bf16.msra.mxu0 %v315_v62 }
 0x347   :  { %v133_v63 = vpop.permute.xlu1 %132  ;;  %v187_v0 = vpop.permute.xlu0 %186 }
 0x348   :  { %v177_v2 = vadd.f32 %v176_v37, %v133_v63  ;;  %v232_v3 = vadd.f32 %v231_v51, %v187_v0  ;;  %v397_v11 = vadd.f32 %v396_v6, %v187_v0 }
 0x349   :  { %473 = vmatmul.mubr.msk.bf16.vlgmr.msra.gmra.mrb[8].mxu0 %vm38_vm4, %v29_v35 }
 0x34a   :  { %v182_v4 = vmax.f32 %v177_v2, 0.0 }
 0x34c   :  { %v237_v5 = vadd.f32 %v232_v3, %v182_v4 }
 0x34e   :  { %239 = vst.msk [vmem:[#allocation4] sm:$0xff] %vm238_vm14, %v237_v5 }
 0x41c   :  { %v351_v10 = vpop.f32.mrb[8].mxu0 }
 0x41d   :  { %v352_v1 = vadd.f32 %v351_v10, %v133_v63  ;;  %v474_v12 = vpop.f32.mrb[9].mxu0 }
 0x41e   :  { %v354_v13 = vpop.f32.mrb[10].mxu0 }
 0x41f   :  { %v357_v14 = vmax.f32 %v352_v1, 0.0  ;;  %v475_v15 = vpop.f32.mrb[11].mxu0 }
 0x421   :  { %v402_v16 = vadd.f32 %v397_v11, %v357_v14 }
 0x423   :  { %404 = vst.msk [vmem:[#allocation4 + $0x8] sm:$0xff] %vm238_vm14, %v402_v16 }
 0x424   :  { %503 = shalt.err (!%p500_p4)
}
 0x425   :  { %s504_s17 = scalar_lea.hbm %s677_s7, 256 }
 0x426   :  { %p505_p5 = scmp.ne.s32.totalorder %s677_s7, %s504_s17  ;;  %p508_p6 = scmp.lt.u32.totalorder %s504_s17, %s677_s7 }
 0x428   :  { %p510_p7 = pnand %p508_p6, %p505_p5 }
 0x42a   :  { %513 = shalt.err (!%p510_p7)
}
 0x42b   :  { %s522_s22 = smov 128   ;;  %s523_s23 = smov 8  }
 0x42c   :  { %416 = dma.vmem_to_hbm [thread:$0]  %s411_s6, 256, %s677_s7, [#allocation5], %s522_s22, %s522_s22, %s523_s23  }
 0x42d   :  { %514 = dma.done.wait [#allocation5], 256  }
 0x42e   :  { %515 = vsyncadd [#allocation5], 4294967040 }
 0x42f   :  { %420 = vsyncpa [#allocation5], 1 }

</bundles_post_ra>
